<compile_context>
chip_gen: v7x
topology: tpu7x:2x2x1
jax: 0.10.0
libtpu: 0.0.40
codegen_flags: <defaults>
</compile_context>

<pallas_src>
import functools

import jax
import jax.numpy as jnp
from jax.experimental import pallas as pl
from jax.experimental.pallas import tpu as pltpu


def _cdiv(a, b):
    return -(-a // b)


def _ce_loss_kernel(s_ref, t_ref, o_ref,
                    acc, m_s, l_s, m_t, d_t, x_t,
                    *, temperature, n_total, n_classes, tile_n, tile_c):
    shard = pl.program_id(0)        # "parallel" axis (megacore / 2-TC split)
    j = pl.program_id(1)            # row-tile axis (serial, carries acc)
    c = pl.program_id(2)            # class-chunk axis (serial, online LSE)
    row_steps = pl.num_programs(1)
    c_steps = pl.num_programs(2)

    inv_t = 1.0 / temperature

    @pl.when((j == 0) & (c == 0))
    def _():
        acc[...] = jnp.zeros_like(acc)

    @pl.when(c == 0)
    def _():
        m_s[...] = jnp.full(m_s.shape, -jnp.inf, jnp.float32)
        l_s[...] = jnp.zeros_like(l_s)
        m_t[...] = jnp.full(m_t.shape, -jnp.inf, jnp.float32)
        d_t[...] = jnp.zeros_like(d_t)
        x_t[...] = jnp.zeros_like(x_t)

    s = s_ref[...].astype(jnp.float32)            # (tile_n, tile_c)
    t = t_ref[...].astype(jnp.float32)            # (tile_n, tile_c)

    # Column masking only when the trailing class chunk is partial (static).
    if n_classes % tile_c != 0:
        col = c * tile_c + jax.lax.broadcasted_iota(jnp.int32, (tile_n, tile_c), 1)
        ok = col < n_classes
        s_m = jnp.where(ok, s, -jnp.inf)
        t_m = jnp.where(ok, t, -jnp.inf)
        s_x = jnp.where(ok, s, 0.0)
    else:
        s_m, t_m, s_x = s, t, s

    # Student: online log-sum-exp of s/T (raw-logit running max, scaled once).
    ms_new = jnp.maximum(m_s[...], jnp.max(s_m, axis=-1, keepdims=True))
    alpha = jnp.exp((m_s[...] - ms_new) * inv_t)
    l_s[...] = alpha * l_s[...] + jnp.sum(jnp.exp((s_m - ms_new) * inv_t),
                                          axis=-1, keepdims=True)
    m_s[...] = ms_new

    # Teacher: online rescaled sums of exp((t-m_t)/T) and exp(...)*s.
    # (log_p is never materialized; the max-shift factor cancels in num/den.)
    mt_new = jnp.maximum(m_t[...], jnp.max(t_m, axis=-1, keepdims=True))
    beta = jnp.exp((m_t[...] - mt_new) * inv_t)
    t_exp = jnp.exp((t_m - mt_new) * inv_t)
    d_t[...] = beta * d_t[...] + jnp.sum(t_exp, axis=-1, keepdims=True)
    x_t[...] = beta * x_t[...] + jnp.sum(t_exp * s_x, axis=-1, keepdims=True)
    m_t[...] = mt_new
    # TODO(synk): if bundle dumps show the VALU/XLU slot saturating with bf16
    # inputs (v6e/v7x), offload these row-sums to the idle MXU via a ones-matmul
    # and/or evaluate the exps in bf16 on the EUP.

    @pl.when(c == c_steps - 1)
    def _():
        # sum_c q*log_p per row = x_t/(T*d_t) - (m_s/T + log(l_s))
        row_val = x_t[...] * inv_t / d_t[...] - (m_s[...] * inv_t + jnp.log(l_s[...]))
        # Mask rows past N (partial / clamped trailing blocks) -> contribute 0.
        row0 = (shard * row_steps + j) * tile_n
        rows = row0 + jax.lax.broadcasted_iota(jnp.int32, (tile_n, 1), 0)
        acc[...] += jnp.where(rows < n_total, row_val, 0.0)

    @pl.when((j == row_steps - 1) & (c == c_steps - 1))
    def _():
        scale = -(temperature * temperature) / float(n_total)
        partial = scale * jnp.sum(acc[...])       # one reduce per shard
        # Lane-dense per-shard partial output block.
        o_ref[...] = jnp.broadcast_to(partial, (1, 128)).astype(jnp.float32)


def _num_tensorcores():
    """Best-effort TensorCores-per-chip (1 on v5e/v6e, 2 on v7x)."""
    try:
        info = pltpu.get_tpu_info()
        for attr in ("num_tensorcores", "tensorcores_per_chip",
                     "num_cores", "cores_per_chip"):
            v = getattr(info, attr, None)
            if v:
                return int(v)
    except Exception:
        pass
    return 1


def _pick_tiles(n, c, itemsize, vmem_cap, num_shards):
    """Row/class tiles budgeting inputs AND live f32 full-tile intermediates."""
    # Class chunking: single chunk for moderate C, else 8192-wide chunks
    # (multiple of 128; a partial trailing chunk is column-masked in-kernel).
    max_tile_c = 8192
    tile_c = c if c <= max_tile_c else max_tile_c

    # Per-row working set:
    #   inputs:        2 arrays x 2 pipeline buffers x tile_c x itemsize
    #   intermediates: ~4 live (tile_n, tile_c) f32 temporaries
    per_row = 4 * tile_c * itemsize + 4 * tile_c * 4

    # Roofline knee: ~3 MiB per input buffer per step already gives ~85% of
    # HBM BW; larger tiles only add vreg/VMEM (spill) pressure.
    knee_rows = (3 << 20) // max(tile_c * itemsize, 1)
    budget_rows = int(vmem_cap * 0.30) // max(per_row, 1)
    tile_n = min(knee_rows, budget_rows)

    # Don't tile past what one shard actually owns.
    per_shard_rows = _cdiv(n, num_shards)
    tile_n = min(tile_n, _cdiv(per_shard_rows, 8) * 8)
    tile_n = max(8, (tile_n // 8) * 8)
    return int(tile_n), int(tile_c)


def ce_loss(student_logits, teacher_logits, temperature=1.0, num_shards=None,
            tile_n=None, tile_c=None):
    """Pallas implementation of CE_Loss.forward.  Inputs: [N, C] logits."""
    assert student_logits.shape == teacher_logits.shape
    assert student_logits.ndim == 2
    N, C = student_logits.shape
    itemsize = jnp.dtype(student_logits.dtype).itemsize

    # Per-generation VMEM capacity (v5e/v6e: 128 MiB, v7x: 64 MiB per TC).
    # Even if this reports per-chip VMEM on 2-TC parts, the 30% budget plus
    # the roofline-knee cap leave ample margin.
    try:
        vmem_cap = int(pltpu.get_tpu_info().vmem_capacity_bytes)
    except Exception:
        vmem_cap = 64 * 1024 * 1024

    if num_shards is None:
        num_shards = _num_tensorcores()
    num_shards = max(1, min(int(num_shards), 2, _cdiv(N, 8)))

    auto_n, auto_c = _pick_tiles(N, C, itemsize, vmem_cap, num_shards)
    tile_n = auto_n if tile_n is None else int(tile_n)
    tile_c = auto_c if tile_c is None else int(tile_c)
    assert tile_n % 8 == 0
    assert tile_c == C or tile_c % 128 == 0

    total_row_blocks = _cdiv(N, tile_n)
    row_steps = _cdiv(total_row_blocks, num_shards)
    c_steps = _cdiv(C, tile_c)
    last_rb = total_row_blocks - 1

    # Ragged N: NO jnp.pad copies.  The trailing row block may be partial (the
    # per-row select zeroes it); row blocks that would start past N are clamped
    # onto the last valid block (their logical rows are fully masked anyway).
    def in_map(s, j, c):
        rb = jnp.minimum(s * row_steps + j, last_rb)
        return (rb, c)

    # Scoped VMEM: double-buffered inputs + live f32 intermediates + scratch,
    # capped at 85% of physical for Mosaic / spill / deeper-buffering headroom.
    buf_bytes = 2 * 2 * tile_n * tile_c * itemsize
    inter_bytes = 4 * tile_n * tile_c * 4
    scratch_bytes = 6 * tile_n * 128 * 4          # (tile_n, 1) pads lanes to 128
    needed = buf_bytes + inter_bytes + scratch_bytes + num_shards * 128 * 4
    vmem_limit = int(min(0.85 * vmem_cap, max(needed + (8 << 20), 32 << 20)))

    kernel = functools.partial(
        _ce_loss_kernel,
        temperature=float(temperature),
        n_total=N, n_classes=C, tile_n=tile_n, tile_c=tile_c,
    )

    cost = pl.CostEstimate(
        flops=int(10 * N * C),
        transcendentals=int(2 * N * C),
        bytes_accessed=int(2 * N * C * itemsize + num_shards * 128 * 4),
    )

    out = pl.pallas_call(
        kernel,
        out_shape=jax.ShapeDtypeStruct((1, num_shards * 128), jnp.float32),
        grid_spec=pltpu.PrefetchScalarGridSpec(
            num_scalar_prefetch=0,
            grid=(num_shards, row_steps, c_steps),
            in_specs=[
                pl.BlockSpec((tile_n, tile_c), in_map),
                pl.BlockSpec((tile_n, tile_c), in_map),
            ],
            # One lane-dense (1, 128) partial-result block per shard.
            out_specs=pl.BlockSpec((1, 128), lambda s, j, c: (0, s)),
            scratch_shapes=[
                pltpu.VMEM((tile_n, 1), jnp.float32),   # acc  (per-row partials)
                pltpu.VMEM((tile_n, 1), jnp.float32),   # m_s  (student running max)
                pltpu.VMEM((tile_n, 1), jnp.float32),   # l_s  (student exp-sum)
                pltpu.VMEM((tile_n, 1), jnp.float32),   # m_t  (teacher running max)
                pltpu.VMEM((tile_n, 1), jnp.float32),   # d_t  (teacher exp-sum)
                pltpu.VMEM((tile_n, 1), jnp.float32),   # x_t  (teacher exp * s sum)
            ],
        ),
        compiler_params=pltpu.CompilerParams(
            # On v7x, verify in a trace that axis 0 lands one shard per TC;
            # switch to pltpu.CORE_PARALLEL for axis 0 if it does not.
            dimension_semantics=("parallel", "arbitrary", "arbitrary"),
            vmem_limit_bytes=vmem_limit,
        ),
        cost_estimate=cost,
    )(student_logits, teacher_logits)

    # Combine per-shard partials (each shard broadcast its scalar over 128 lanes).
    partials = out.reshape(num_shards, 128)[:, 0]
    return jnp.sum(partials)


def ce_loss_ref(student_logits, teacher_logits, temperature=1.0):
    """Pure-JAX reference mirroring the PyTorch module."""
    T = temperature
    log_p = jax.nn.log_softmax(student_logits / T, axis=1)
    q = jax.nn.softmax(teacher_logits / T, axis=1)
    return -T * T * jnp.sum(log_p * q) / student_logits.shape[0]


if __name__ == "__main__":
    key = jax.random.PRNGKey(0)
    k1, k2, k3, k4 = jax.random.split(key, 4)
    T = 2.0

    # Small demo consistent with the module: batch=16 rows, 32 classes.
    student = jax.random.normal(k1, (16, 32), dtype=jnp.float32)
    teacher = jax.random.normal(k2, (16, 32), dtype=jnp.float32)
    loss = jax.block_until_ready(ce_loss(student, teacher, temperature=T))
    ref = ce_loss_ref(student, teacher, temperature=T)
    assert jnp.allclose(loss, ref, rtol=1e-4, atol=1e-4), (loss, ref)

    # Extra validation: ragged batch (N=22, not a multiple of 8, no padding
    # copies), class-chunked online-LSE path (C=200 with 128-wide chunks, so
    # the trailing class chunk is partial), and a 2-way shard split.
    s2 = 3.0 * jax.random.normal(k3, (22, 200), dtype=jnp.float32)
    t2 = 3.0 * jax.random.normal(k4, (22, 200), dtype=jnp.float32)
    loss2 = jax.block_until_ready(
        ce_loss(s2, t2, temperature=T, num_shards=2, tile_n=8, tile_c=128))
    ref2 = ce_loss_ref(s2, t2, temperature=T)
    assert jnp.allclose(loss2, ref2, rtol=1e-4, atol=1e-4), (loss2, ref2)

    print("KERNEL_OK")
</pallas_src>

<mosaic_0001>
module attributes {stable_mosaic.version = 11 : i64} {
  func.func @_ce_loss_kernel(%arg0: i32, %arg1: i32, %arg2: i32, %arg3: memref<16x32xf32, #tpu.memory_space<vmem>>, %arg4: memref<16x32xf32, #tpu.memory_space<vmem>>, %arg5: memref<1x128xf32, #tpu.memory_space<vmem>>, %arg6: memref<16x1xf32, #tpu.memory_space<vmem>>, %arg7: memref<16x1xf32, #tpu.memory_space<vmem>>, %arg8: memref<16x1xf32, #tpu.memory_space<vmem>>, %arg9: memref<16x1xf32, #tpu.memory_space<vmem>>, %arg10: memref<16x1xf32, #tpu.memory_space<vmem>>, %arg11: memref<16x1xf32, #tpu.memory_space<vmem>>) attributes {dimension_semantics = [#tpu.dimension_semantics<parallel>, #tpu.dimension_semantics<arbitrary>, #tpu.dimension_semantics<arbitrary>], iteration_bounds = array<i64: 1, 1, 1>, scalar_prefetch = 0 : i64, scratch_operands = 6 : i64, tpu.core_type = #tpu.core_type<tc>, window_params = [{transform_indices = @transform_0, window_bounds = array<i64: 16, 32>}, {transform_indices = @transform_1, window_bounds = array<i64: 16, 32>}, {transform_indices = @transform_2, window_bounds = array<i64: 1, 128>}]} {
    %c0_i32 = arith.constant 0 : i32
    %0 = arith.cmpi eq, %arg1, %c0_i32 : i32
    %c0_i32_0 = arith.constant 0 : i32
    %1 = arith.cmpi eq, %arg2, %c0_i32_0 : i32
    %2 = arith.andi %0, %1 : i1
    %3 = arith.extui %2 : i1 to i32
    %c0_i32_1 = arith.constant 0 : i32
    %4 = arith.cmpi ne, %3, %c0_i32_1 : i32
    scf.if %4 {
      %cst_44 = arith.constant 0.000000e+00 : f32
      %67 = vector.broadcast %cst_44 : f32 to vector<16x1xf32>
      %c0_45 = arith.constant 0 : index
      %c0_46 = arith.constant 0 : index
      %68 = vector.load %arg6[%c0_45, %c0_46] : memref<16x1xf32, #tpu.memory_space<vmem>>, vector<16x1xf32>
      tpu.vector_store %arg6[%c0_45, %c0_46], %67 {strides = array<i32>} : memref<16x1xf32, #tpu.memory_space<vmem>>, vector<16x1xf32>,
    } else {
    }
    %c0_i32_2 = arith.constant 0 : i32
    %5 = arith.cmpi eq, %arg2, %c0_i32_2 : i32
    %6 = arith.extui %5 : i1 to i32
    %c0_i32_3 = arith.constant 0 : i32
    %7 = arith.cmpi ne, %6, %c0_i32_3 : i32
    scf.if %7 {
      %cst_44 = arith.constant 0xFF800000 : f32
      %67 = vector.broadcast %cst_44 : f32 to vector<16x1xf32>
      %c0_45 = arith.constant 0 : index
      %c0_46 = arith.constant 0 : index
      %68 = vector.load %arg7[%c0_45, %c0_46] : memref<16x1xf32, #tpu.memory_space<vmem>>, vector<16x1xf32>
      tpu.vector_store %arg7[%c0_45, %c0_46], %67 {strides = array<i32>} : memref<16x1xf32, #tpu.memory_space<vmem>>, vector<16x1xf32>,
      %cst_47 = arith.constant 0.000000e+00 : f32
      %69 = vector.broadcast %cst_47 : f32 to vector<16x1xf32>
      %c0_48 = arith.constant 0 : index
      %c0_49 = arith.constant 0 : index
      %70 = vector.load %arg8[%c0_48, %c0_49] : memref<16x1xf32, #tpu.memory_space<vmem>>, vector<16x1xf32>
      tpu.vector_store %arg8[%c0_48, %c0_49], %69 {strides = array<i32>} : memref<16x1xf32, #tpu.memory_space<vmem>>, vector<16x1xf32>,
      %cst_50 = arith.constant 0xFF800000 : f32
      %71 = vector.broadcast %cst_50 : f32 to vector<16x1xf32>
      %c0_51 = arith.constant 0 : index
      %c0_52 = arith.constant 0 : index
      %72 = vector.load %arg9[%c0_51, %c0_52] : memref<16x1xf32, #tpu.memory_space<vmem>>, vector<16x1xf32>
      tpu.vector_store %arg9[%c0_51, %c0_52], %71 {strides = array<i32>} : memref<16x1xf32, #tpu.memory_space<vmem>>, vector<16x1xf32>,
      %cst_53 = arith.constant 0.000000e+00 : f32
      %73 = vector.broadcast %cst_53 : f32 to vector<16x1xf32>
      %c0_54 = arith.constant 0 : index
      %c0_55 = arith.constant 0 : index
      %74 = vector.load %arg10[%c0_54, %c0_55] : memref<16x1xf32, #tpu.memory_space<vmem>>, vector<16x1xf32>
      tpu.vector_store %arg10[%c0_54, %c0_55], %73 {strides = array<i32>} : memref<16x1xf32, #tpu.memory_space<vmem>>, vector<16x1xf32>,
      %cst_56 = arith.constant 0.000000e+00 : f32
      %75 = vector.broadcast %cst_56 : f32 to vector<16x1xf32>
      %c0_57 = arith.constant 0 : index
      %c0_58 = arith.constant 0 : index
      %76 = vector.load %arg11[%c0_57, %c0_58] : memref<16x1xf32, #tpu.memory_space<vmem>>, vector<16x1xf32>
      tpu.vector_store %arg11[%c0_57, %c0_58], %75 {strides = array<i32>} : memref<16x1xf32, #tpu.memory_space<vmem>>, vector<16x1xf32>,
    } else {
    }
    %c0 = arith.constant 0 : index
    %c0_4 = arith.constant 0 : index
    %8 = vector.load %arg3[%c0, %c0_4] : memref<16x32xf32, #tpu.memory_space<vmem>>, vector<16x32xf32>
    %c0_5 = arith.constant 0 : index
    %c0_6 = arith.constant 0 : index
    %9 = vector.load %arg4[%c0_5, %c0_6] : memref<16x32xf32, #tpu.memory_space<vmem>>, vector<16x32xf32>
    %c0_7 = arith.constant 0 : index
    %c0_8 = arith.constant 0 : index
    %10 = vector.load %arg7[%c0_7, %c0_8] : memref<16x1xf32, #tpu.memory_space<vmem>>, vector<16x1xf32>
    %cst = arith.constant dense<0xFF800000> : vector<16xf32>
    %11 = vector.multi_reduction <maximumf>, %8, %cst [1] : vector<16x32xf32> to vector<16xf32>
    %12 = vector.shape_cast %11 : vector<16xf32> to vector<16x1xf32>
    %13 = arith.maximumf %10, %12 : vector<16x1xf32>
    %c0_9 = arith.constant 0 : index
    %c0_10 = arith.constant 0 : index
    %14 = vector.load %arg7[%c0_9, %c0_10] : memref<16x1xf32, #tpu.memory_space<vmem>>, vector<16x1xf32>
    %15 = arith.subf %14, %13 : vector<16x1xf32>
    %cst_11 = arith.constant 5.000000e-01 : f32
    %16 = vector.broadcast %cst_11 : f32 to vector<16x1xf32>
    %17 = arith.mulf %15, %16 : vector<16x1xf32>
    %18 = math.exp %17 : vector<16x1xf32>
    %c0_12 = arith.constant 0 : index
    %c0_13 = arith.constant 0 : index
    %19 = vector.load %arg8[%c0_12, %c0_13] : memref<16x1xf32, #tpu.memory_space<vmem>>, vector<16x1xf32>
    %20 = arith.mulf %18, %19 : vector<16x1xf32>
    %21 = vector.broadcast %13 : vector<16x1xf32> to vector<16x32xf32>
    %22 = arith.subf %8, %21 : vector<16x32xf32>
    %cst_14 = arith.constant 5.000000e-01 : f32
    %23 = vector.broadcast %cst_14 : f32 to vector<16x32xf32>
    %24 = arith.mulf %22, %23 : vector<16x32xf32>
    %25 = math.exp %24 : vector<16x32xf32>
    %cst_15 = arith.constant dense<0.000000e+00> : vector<16xf32>
    %26 = vector.multi_reduction <add>, %25, %cst_15 [1] : vector<16x32xf32> to vector<16xf32>
    %27 = vector.shape_cast %26 : vector<16xf32> to vector<16x1xf32>
    %28 = arith.addf %20, %27 : vector<16x1xf32>
    %c0_16 = arith.constant 0 : index
    %c0_17 = arith.constant 0 : index
    %29 = vector.load %arg8[%c0_16, %c0_17] : memref<16x1xf32, #tpu.memory_space<vmem>>, vector<16x1xf32>
    tpu.vector_store %arg8[%c0_16, %c0_17], %28 {strides = array<i32>} : memref<16x1xf32, #tpu.memory_space<vmem>>, vector<16x1xf32>,
    %c0_18 = arith.constant 0 : index
    %c0_19 = arith.constant 0 : index
    %30 = vector.load %arg7[%c0_18, %c0_19] : memref<16x1xf32, #tpu.memory_space<vmem>>, vector<16x1xf32>
    tpu.vector_store %arg7[%c0_18, %c0_19], %13 {strides = array<i32>} : memref<16x1xf32, #tpu.memory_space<vmem>>, vector<16x1xf32>,
    %c0_20 = arith.constant 0 : index
    %c0_21 = arith.constant 0 : index
    %31 = vector.load %arg9[%c0_20, %c0_21] : memref<16x1xf32, #tpu.memory_space<vmem>>, vector<16x1xf32>
    %cst_22 = arith.constant dense<0xFF800000> : vector<16xf32>
    %32 = vector.multi_reduction <maximumf>, %9, %cst_22 [1] : vector<16x32xf32> to vector<16xf32>
    %33 = vector.shape_cast %32 : vector<16xf32> to vector<16x1xf32>
    %34 = arith.maximumf %31, %33 : vector<16x1xf32>
    %c0_23 = arith.constant 0 : index
    %c0_24 = arith.constant 0 : index
    %35 = vector.load %arg9[%c0_23, %c0_24] : memref<16x1xf32, #tpu.memory_space<vmem>>, vector<16x1xf32>
    %36 = arith.subf %35, %34 : vector<16x1xf32>
    %cst_25 = arith.constant 5.000000e-01 : f32
    %37 = vector.broadcast %cst_25 : f32 to vector<16x1xf32>
    %38 = arith.mulf %36, %37 : vector<16x1xf32>
    %39 = math.exp %38 : vector<16x1xf32>
    %40 = vector.broadcast %34 : vector<16x1xf32> to vector<16x32xf32>
    %41 = arith.subf %9, %40 : vector<16x32xf32>
    %cst_26 = arith.constant 5.000000e-01 : f32
    %42 = vector.broadcast %cst_26 : f32 to vector<16x32xf32>
    %43 = arith.mulf %41, %42 : vector<16x32xf32>
    %44 = math.exp %43 : vector<16x32xf32>
    %c0_27 = arith.constant 0 : index
    %c0_28 = arith.constant 0 : index
    %45 = vector.load %arg10[%c0_27, %c0_28] : memref<16x1xf32, #tpu.memory_space<vmem>>, vector<16x1xf32>
    %46 = arith.mulf %39, %45 : vector<16x1xf32>
    %cst_29 = arith.constant dense<0.000000e+00> : vector<16xf32>
    %47 = vector.multi_reduction <add>, %44, %cst_29 [1] : vector<16x32xf32> to vector<16xf32>
    %48 = vector.shape_cast %47 : vector<16xf32> to vector<16x1xf32>
    %49 = arith.addf %46, %48 : vector<16x1xf32>
    %c0_30 = arith.constant 0 : index
    %c0_31 = arith.constant 0 : index
    %50 = vector.load %arg10[%c0_30, %c0_31] : memref<16x1xf32, #tpu.memory_space<vmem>>, vector<16x1xf32>
    tpu.vector_store %arg10[%c0_30, %c0_31], %49 {strides = array<i32>} : memref<16x1xf32, #tpu.memory_space<vmem>>, vector<16x1xf32>,
    %c0_32 = arith.constant 0 : index
    %c0_33 = arith.constant 0 : index
    %51 = vector.load %arg11[%c0_32, %c0_33] : memref<16x1xf32, #tpu.memory_space<vmem>>, vector<16x1xf32>
    %52 = arith.mulf %39, %51 : vector<16x1xf32>
    %53 = arith.mulf %44, %8 : vector<16x32xf32>
    %cst_34 = arith.constant dense<0.000000e+00> : vector<16xf32>
    %54 = vector.multi_reduction <add>, %53, %cst_34 [1] : vector<16x32xf32> to vector<16xf32>
    %55 = vector.shape_cast %54 : vector<16xf32> to vector<16x1xf32>
    %56 = arith.addf %52, %55 : vector<16x1xf32>
    %c0_35 = arith.constant 0 : index
    %c0_36 = arith.constant 0 : index
    %57 = vector.load %arg11[%c0_35, %c0_36] : memref<16x1xf32, #tpu.memory_space<vmem>>, vector<16x1xf32>
    tpu.vector_store %arg11[%c0_35, %c0_36], %56 {strides = array<i32>} : memref<16x1xf32, #tpu.memory_space<vmem>>, vector<16x1xf32>,
    %c0_37 = arith.constant 0 : index
    %c0_38 = arith.constant 0 : index
    %58 = vector.load %arg9[%c0_37, %c0_38] : memref<16x1xf32, #tpu.memory_space<vmem>>, vector<16x1xf32>
    tpu.vector_store %arg9[%c0_37, %c0_38], %34 {strides = array<i32>} : memref<16x1xf32, #tpu.memory_space<vmem>>, vector<16x1xf32>,
    %c0_i32_39 = arith.constant 0 : i32
    %59 = arith.cmpi eq, %arg2, %c0_i32_39 : i32
    %60 = arith.extui %59 : i1 to i32
    %c0_i32_40 = arith.constant 0 : i32
    %61 = arith.cmpi ne, %60, %c0_i32_40 : i32
    scf.if %61 {
      %c0_44 = arith.constant 0 : index
      %c0_45 = arith.constant 0 : index
      %67 = vector.load %arg11[%c0_44, %c0_45] : memref<16x1xf32, #tpu.memory_space<vmem>>, vector<16x1xf32>
      %cst_46 = arith.constant 5.000000e-01 : f32
      %68 = vector.broadcast %cst_46 : f32 to vector<16x1xf32>
      %69 = arith.mulf %67, %68 : vector<16x1xf32>
      %c0_47 = arith.constant 0 : index
      %c0_48 = arith.constant 0 : index
      %70 = vector.load %arg10[%c0_47, %c0_48] : memref<16x1xf32, #tpu.memory_space<vmem>>, vector<16x1xf32>
      %71 = arith.divf %69, %70 : vector<16x1xf32>
      %c0_49 = arith.constant 0 : index
      %c0_50 = arith.constant 0 : index
      %72 = vector.load %arg7[%c0_49, %c0_50] : memref<16x1xf32, #tpu.memory_space<vmem>>, vector<16x1xf32>
      %cst_51 = arith.constant 5.000000e-01 : f32
      %73 = vector.broadcast %cst_51 : f32 to vector<16x1xf32>
      %74 = arith.mulf %72, %73 : vector<16x1xf32>
      %c0_52 = arith.constant 0 : index
      %c0_53 = arith.constant 0 : index
      %75 = vector.load %arg8[%c0_52, %c0_53] : memref<16x1xf32, #tpu.memory_space<vmem>>, vector<16x1xf32>
      %76 = math.log %75 : vector<16x1xf32>
      %77 = arith.addf %74, %76 : vector<16x1xf32>
      %78 = arith.subf %71, %77 : vector<16x1xf32>
      %c1_i32 = arith.constant 1 : i32
      %79 = arith.muli %arg0, %c1_i32 : i32
      %80 = arith.addi %79, %arg1 : i32
      %c16_i32 = arith.constant 16 : i32
      %81 = arith.muli %80, %c16_i32 : i32
      %82 = tpu.iota {dimensions = array<i32: 0>} : vector<16x1xi32>
      %83 = vector.broadcast %81 : i32 to vector<16x1xi32>
      %84 = arith.addi %83, %82 : vector<16x1xi32>
      %c0_54 = arith.constant 0 : index
      %c0_55 = arith.constant 0 : index
      %85 = vector.load %arg6[%c0_54, %c0_55] : memref<16x1xf32, #tpu.memory_space<vmem>>, vector<16x1xf32>
      %c16_i32_56 = arith.constant 16 : i32
      %86 = vector.broadcast %c16_i32_56 : i32 to vector<16x1xi32>
      %87 = arith.cmpi slt, %84, %86 : vector<16x1xi32>
      %cst_57 = arith.constant 0.000000e+00 : f32
      %88 = vector.broadcast %cst_57 : f32 to vector<16x1xf32>
      %89 = arith.select %87, %78, %88 : vector<16x1xi1>, vector<16x1xf32>
      %90 = arith.addf %85, %89 : vector<16x1xf32>
      %c0_58 = arith.constant 0 : index
      %c0_59 = arith.constant 0 : index
      %91 = vector.load %arg6[%c0_58, %c0_59] : memref<16x1xf32, #tpu.memory_space<vmem>>, vector<16x1xf32>
      tpu.vector_store %arg6[%c0_58, %c0_59], %90 {strides = array<i32>} : memref<16x1xf32, #tpu.memory_space<vmem>>, vector<16x1xf32>,
    } else {
    }
    %c0_i32_41 = arith.constant 0 : i32
    %62 = arith.cmpi eq, %arg1, %c0_i32_41 : i32
    %c0_i32_42 = arith.constant 0 : i32
    %63 = arith.cmpi eq, %arg2, %c0_i32_42 : i32
    %64 = arith.andi %62, %63 : i1
    %65 = arith.extui %64 : i1 to i32
    %c0_i32_43 = arith.constant 0 : i32
    %66 = arith.cmpi ne, %65, %c0_i32_43 : i32
    scf.if %66 {
      %c0_44 = arith.constant 0 : index
      %c0_45 = arith.constant 0 : index
      %67 = vector.load %arg6[%c0_44, %c0_45] : memref<16x1xf32, #tpu.memory_space<vmem>>, vector<16x1xf32>
      %68 = vector.shape_cast %67 : vector<16x1xf32> to vector<1x16x1xf32>
      %cst_46 = arith.constant dense<0.000000e+00> : vector<1xf32>
      %69 = vector.multi_reduction <add>, %68, %cst_46 [1, 2] : vector<1x16x1xf32> to vector<1xf32>
      %70 = vector.shape_cast %69 : vector<1xf32> to vector<1x1x1xf32>
      %71 = vector.extract %70[0, 0, 0] : f32 from vector<1x1x1xf32>
      %cst_47 = arith.constant -2.500000e-01 : f32
      %72 = arith.mulf %cst_47, %71 : f32
      %73 = vector.broadcast %72 : f32 to vector<1x128xf32>
      %c0_48 = arith.constant 0 : index
      %c0_49 = arith.constant 0 : index
      %74 = vector.load %arg5[%c0_48, %c0_49] : memref<1x128xf32, #tpu.memory_space<vmem>>, vector<1x128xf32>
      tpu.vector_store %arg5[%c0_48, %c0_49], %73 {strides = array<i32>} : memref<1x128xf32, #tpu.memory_space<vmem>>, vector<1x128xf32>,
    } else {
    }
    return
  }
  func.func @transform_0(%arg0: i32, %arg1: i32, %arg2: i32) -> (i32, i32) {
    %c1_i32 = arith.constant 1 : i32
    %0 = arith.muli %arg0, %c1_i32 : i32
    %1 = arith.addi %0, %arg1 : i32
    %c0_i32 = arith.constant 0 : i32
    %2 = arith.minsi %1, %c0_i32 : i32
    %c0_i32_0 = arith.constant 0 : i32
    return %2, %arg2 : i32, i32
  }
  func.func @transform_1(%arg0: i32, %arg1: i32, %arg2: i32) -> (i32, i32) {
    %c1_i32 = arith.constant 1 : i32
    %0 = arith.muli %arg0, %c1_i32 : i32
    %1 = arith.addi %0, %arg1 : i32
    %c0_i32 = arith.constant 0 : i32
    %2 = arith.minsi %1, %c0_i32 : i32
    %c0_i32_0 = arith.constant 0 : i32
    return %2, %arg2 : i32, i32
  }
  func.func @transform_2(%arg0: i32, %arg1: i32, %arg2: i32) -> (i32, i32) {
    %c0_i32 = arith.constant 0 : i32
    %c0_i32_0 = arith.constant 0 : i32
    return %c0_i32, %arg0 : i32, i32
  }
}

</mosaic_0001>

<bundles_post_ra>
// kernel: tpu_custom_call.1
= control target key start
LH: loop header
LB: loop body
LE: loop exit
PB: predicated region body
PF: predicated region fallthrough
CT: control target
= control target key end

     0   :  { %7 = vsyncpa [#allocation9], 0  ;;  %s514_s0 = inlined_call_operand.hbm [shape: f32[16,32], index: 0, kind: input, shape index: {}]   ;;  %s515_s1 = inlined_call_operand.hbm [shape: f32[16,32], index: 1, kind: input, shape index: {}]   ;;  %s516_s2 = inlined_call_operand.hbm [shape: f32[1,128], index: 2, kind: output, shape index: {}]  }
   0x1   :  { %8 = vsyncpa [#allocation12], 0 }
   0x2   :  { %9 = vsyncpa [#allocation10], 0  ;;  %s401_s9 = smov [#allocation8]   ;;  %s329_s13 = scalar_lea.hbm %s514_s0, 256 }
   0x3   :  { %s21_s10 = sshll.u32 %s401_s9, 4  ;;  %p330_p0 = scmp.ne.s32.totalorder %s514_s0, %s329_s13  ;;  %s22_s10 = int_to_ptr.vmem [resolvable:$true] %s21_s10 }
   0x4   :  { %p333_p1 = scmp.lt.u32.totalorder %s329_s13, %s514_s0 }
   0x6   :  { %p335_p2 = pnand %p333_p1, %p330_p0 }
   0x8   :  { %338 = shalt.err (!%p335_p2)
}
   0x9   :  { %s339_s18 = scalar_lea.vmem %s22_s10, 256  ;;  %p344_p4 = scmp.lt.s32.totalorder %s22_s10, %s22_s10 }
   0xa   :  { %p340_p3 = scmp.ne.s32.totalorder %s22_s10, %s339_s18  ;;  %p345_p5 = scmp.lt.s32.totalorder %s339_s18, %s339_s18 }
   0xc   :  { %p346_p6 = por %p345_p5, %p344_p4 }
   0xe   :  { %p347_p7 = pnand %p346_p6, %p340_p3 }
  0x10   :  { %350 = shalt.err (!%p347_p7)
}
  0x11   :  { %s402_s19 = smov 128   ;;  %s403_s20 = smov 8  }
  0x12   :  { %27 = dma.hbm_to_vmem [thread:$0]  %s514_s0, 256, %s22_s10, [#allocation9], %s402_s19, %s402_s19, %s403_s20  }
  0x13   :  { %s404_s23 = smov [#allocation11]   ;;  %s351_s27 = scalar_lea.hbm %s515_s1, 256 }
  0x14   :  { %s39_s24 = sshll.u32 %s404_s23, 4  ;;  %p352_p8 = scmp.ne.s32.totalorder %s515_s1, %s351_s27  ;;  %s40_s24 = int_to_ptr.vmem [resolvable:$true] %s39_s24 }
  0x15   :  { %p355_p9 = scmp.lt.u32.totalorder %s351_s27, %s515_s1 }
  0x17   :  { %p357_p10 = pnand %p355_p9, %p352_p8 }
  0x19   :  { %360 = shalt.err (!%p357_p10)
}
  0x1a   :  { %s361_s4 = scalar_lea.vmem %s40_s24, 256  ;;  %p366_p12 = scmp.lt.s32.totalorder %s40_s24, %s40_s24 }
  0x1b   :  { %p362_p11 = scmp.ne.s32.totalorder %s40_s24, %s361_s4  ;;  %p367_p13 = scmp.lt.s32.totalorder %s361_s4, %s361_s4 }
  0x1d   :  { %p368_p0 = por %p367_p13, %p366_p12 }
  0x1f   :  { %p369_p1 = pnand %p368_p0, %p362_p11 }
  0x21   :  { %372 = shalt.err (!%p369_p1)
}
  0x22   :  { %45 = dma.hbm_to_vmem [thread:$0]  %s515_s1, 256, %s40_s24, [#allocation12], %s402_s19, %s402_s19, %s403_s20  }
  0x23   :  { %395 = dma.done.wait [#allocation9], 256  }
  0x24   :  { %396 = vsyncadd [#allocation9], 4294967040 }
  0x25   :  { %397 = dma.done.wait [#allocation12], 256  }
  0x26   :  { %398 = vsyncadd [#allocation12], 4294967040  ;;  %vm66_vm0 = vcmask 7168   ;;  %v405_v0 = vmov -inf   ;;  %vm89_vm1 = vcmask 261120   ;;  %v452_v1 = vld [vmem:[#allocation8] sm:$0xff] }
  0x27   :  { %73 = vst.msk [vmem:[#allocation3] sm:$0xff] %vm66_vm0, %v405_v0  ;;  %74 = vst.msk [vmem:[#allocation3 + $0x8] sm:$0xff] %vm66_vm0, %v405_v0  ;;  %v454_v2 = vld [vmem:[#allocation8 + $0x8] sm:$0xff]  ;;  %v85_v3 = vld [vmem:[#allocation11] sm:$0xff]  ;;  %v90_v4 = vsel %vm89_vm1, %v452_v1, -inf  ;;  %v406_v9 = vmov 0  }
  0x28   :  { %77 = vst.msk [vmem:[#allocation5] sm:$0xff] %vm66_vm0, %v405_v0  ;;  %78 = vst.msk [vmem:[#allocation5 + $0x8] sm:$0xff] %vm66_vm0, %v405_v0  ;;  %v143_v5 = vsel %vm89_vm1, %v85_v3, -inf  ;;  %v86_v6 = vld [vmem:[#allocation11 + $0x8] sm:$0xff]  ;;  %91 = vmax.xlane.f32.xlu0 %v90_v4  ;;  %v93_v7 = vsel %vm89_vm1, %v454_v2, -inf  ;;  %304 = vset.pattern.permute.xlu1 %v406_v9  ;;  %v407_v10 = vmov 0.0  }
  0x29   :  { %144 = vmax.xlane.f32.xlu1 %v143_v5  ;;  %v146_v8 = vsel %vm89_vm1, %v86_v6, -inf  ;;  %303 = vset.pattern.permute.xlu0 %v406_v9  ;;  %75 = vst.msk [vmem:[#allocation4] sm:$0xff] %vm66_vm0, %v407_v10  ;;  %67 = vst.msk [vmem:[#allocation2] sm:$0xff] %vm66_vm0, %v407_v10  ;;  %s408_s1 = smov [#allocation13]  }
  0x2a   :  { %68 = vst.msk [vmem:[#allocation2 + $0x8] sm:$0xff] %vm66_vm0, %v407_v10  ;;  %76 = vst.msk [vmem:[#allocation4 + $0x8] sm:$0xff] %vm66_vm0, %v407_v10  ;;  %s279_s6 = sshll.u32 %s408_s1, 4  ;;  %s280_s6 = int_to_ptr.vmem [resolvable:$true] %s279_s6 }
  0x2b   :  { %79 = vst.msk [vmem:[#allocation6] sm:$0xff] %vm66_vm0, %v407_v10  ;;  %80 = vst.msk [vmem:[#allocation6 + $0x8] sm:$0xff] %vm66_vm0, %v407_v10  ;;  %s373_s9 = scalar_lea.vmem %s280_s6, 16  ;;  %s377_s10 = scalar_lea.vmem %s280_s6, 32 }
  0x2c   :  { %94 = vmax.xlane.f32.xlu0 %v93_v7  ;;  %81 = vst.msk [vmem:[#allocation7] sm:$0xff] %vm66_vm0, %v407_v10  ;;  %82 = vst.msk [vmem:[#allocation7 + $0x8] sm:$0xff] %vm66_vm0, %v407_v10  ;;  %p374_p2 = scmp.ne.s32.totalorder %s280_s6, %s373_s9  ;;  %p378_p3 = scmp.lt.s32.totalorder %s280_s6, %s280_s6 }
  0x2d   :  { %147 = vmax.xlane.f32.xlu1 %v146_v8  ;;  %p379_p4 = scmp.lt.s32.totalorder %s377_s10, %s373_s9 }
  0x2e   :  { %v87_v11 = vld [vmem:[#allocation3] sm:$0xff]  ;;  %v88_v17 = vld [vmem:[#allocation3 + $0x8] sm:$0xff] }
  0x2f   :  { %v470_v12 = vld [vmem:[#allocation5] sm:$0xff]  ;;  %v473_v18 = vld [vmem:[#allocation5 + $0x8] sm:$0xff]  ;;  %p380_p5 = por %p379_p4, %p378_p3 }
  0x30   :  { %v106_v0 = vld [vmem:[#allocation4] sm:$0xff] }
  0x31   :  { %v107_v4 = vld [vmem:[#allocation4 + $0x8] sm:$0xff]  ;;  %p381_p6 = pnand %p380_p5, %p374_p2 }
  0x32   :  { %v177_v9 = vld [vmem:[#allocation6] sm:$0xff] }
  0xb5   :  { %v92_v13 = vpop.xlane.xlu0 %91 }
  0xb6   :  { %v145_v14 = vpop.xlane.xlu1 %144  ;;  %v96_v15 = vmax.f32 %v87_v11, %v92_v13 }
  0xb7   :  { %v149_v16 = vmax.f32 %v470_v12, %v145_v14  ;;  %v178_v14 = vld [vmem:[#allocation6 + $0x8] sm:$0xff] }
  0xb8   :  { %v98_v19 = vsub.f32 %v87_v11, %v96_v15  ;;  %139 = vst.msk [vmem:[#allocation3] sm:$0xff] %vm66_vm0, %v96_v15  ;;  %112 = vperm.xlu0 %303, %v96_v15  }
  0xb9   :  { %v151_v20 = vsub.f32 %v470_v12, %v149_v16  ;;  %207 = vst.msk [vmem:[#allocation5] sm:$0xff] %vm66_vm0, %v149_v16  ;;  %v95_v21 = vpop.xlane.xlu0 %94 }
  0xba   :  { %v148_v22 = vpop.xlane.xlu1 %147  ;;  %v97_v23 = vmax.f32 %v88_v17, %v95_v21  ;;  %v100_v55 = vmul.f32 0.5, %v98_v19  ;;  %v191_v19 = vld [vmem:[#allocation7] sm:$0xff] }
  0xbb   :  { %v150_v24 = vmax.f32 %v473_v18, %v148_v22  ;;  %v153_v59 = vmul.f32 0.5, %v151_v20 }
  0xbc   :  { %v99_v25 = vsub.f32 %v88_v17, %v97_v23  ;;  %140 = vst.msk [vmem:[#allocation3 + $0x8] sm:$0xff] %vm66_vm0, %v97_v23  ;;  %117 = vperm.xlu1 %304, %v97_v23   ;;  %v102_v56 = vmul.f32 1.442695, %v100_v55 }
  0xbd   :  { %v152_v26 = vsub.f32 %v473_v18, %v150_v24  ;;  %208 = vst.msk [vmem:[#allocation5 + $0x8] sm:$0xff] %vm66_vm0, %v150_v24  ;;  %v155_v60 = vmul.f32 1.442695, %v153_v59 }
  0xbe   :  { %v101_v57 = vmul.f32 0.5, %v99_v25 }
  0xbf   :  { %v154_v61 = vmul.f32 0.5, %v152_v26 }
  0xc0   :  { %161 = vperm.xlu1 %304, %v149_v16   ;;  %v104_v58 = vmul.f32 1.442695, %v101_v57 }
  0xc1   :  { %v157_v62 = vmul.f32 1.442695, %v154_v61 }
  0xc4   :  { %166 = vperm.xlu1 %304, %v150_v24   ;;  %v192_v24 = vld [vmem:[#allocation7 + $0x8] sm:$0xff] }
 0x137   :  { %v113_v27 = vpop.permute.xlu0 %112 }
 0x138   :  { %v120_v28 = vsub.f32 %v452_v1, %v113_v27 }
 0x13a   :  { %v122_v29 = vmul.f32 0.5, %v120_v28 }
 0x13b   :  { %v118_v30 = vpop.permute.xlu1 %117 }
 0x13c   :  { %v124_v31 = vmul.f32 1.442695, %v122_v29  ;;  %v121_v32 = vsub.f32 %v454_v2, %v118_v30 }
 0x13e   :  { %305 = vpow2.f32 %v124_v31  ;;  %v123_v33 = vmul.f32 0.5, %v121_v32  ;;  %v222_v32 = vld [vmem:[#allocation3] sm:$0xff] }
 0x13f   :  { %v162_v34 = vpop.permute.xlu1 %161 }
 0x140   :  { %v126_v35 = vmul.f32 1.442695, %v123_v33  ;;  %v169_v36 = vsub.f32 %v85_v3, %v162_v34 }
 0x142   :  { %307 = vpow2.f32 %v126_v35  ;;  %v171_v37 = vmul.f32 0.5, %v169_v36 }
 0x143   :  { %v167_v38 = vpop.permute.xlu1 %166 }
 0x144   :  { %v173_v39 = vmul.f32 1.442695, %v171_v37  ;;  %v170_v40 = vsub.f32 %v86_v6, %v167_v38  ;;  %v224_v37 = vmul.f32 0.5, %v222_v32 }
 0x146   :  { %309 = vpow2.f32 %v173_v39  ;;  %v172_v41 = vmul.f32 0.5, %v170_v40  ;;  %v223_v39 = vld [vmem:[#allocation3 + $0x8] sm:$0xff] }
 0x148   :  { %v306_v42 = vpop.eup %305  ;;  %v175_v43 = vmul.f32 1.442695, %v172_v41 }
 0x149   :  { %v128_v44 = vsel %vm89_vm1, %v306_v42, 0.0 }
 0x14a   :  { %311 = vpow2.f32 %v175_v43  ;;  %129 = vadd.xlane.f32.xlu1 %v128_v44 }
 0x14b   :  { %313 = vpow2.f32 %v102_v56 }
 0x14c   :  { %v308_v45 = vpop.eup %307  ;;  %315 = vpow2.f32 %v104_v58 }
 0x14d   :  { %v131_v46 = vsel %vm89_vm1, %v308_v45, 0.0  ;;  %317 = vpow2.f32 %v155_v60  ;;  %v244_v45 = vld [vmem:[#allocation2] sm:$0xff] }
 0x14e   :  { %132 = vadd.xlane.f32.xlu0 %v131_v46  ;;  %319 = vpow2.f32 %v157_v62  ;;  %v225_v46 = vmul.f32 0.5, %v223_v39 }
 0x150   :  { %v310_v47 = vpop.eup %309 }
 0x151   :  { %v181_v48 = vsel %vm89_vm1, %v310_v47, 0.0  ;;  %v195_v51 = vmul.f32 %v310_v47, %v452_v1 }
 0x152   :  { %182 = vadd.xlane.f32.xlu1 %v181_v48 }
 0x153   :  { %v197_v52 = vsel %vm89_vm1, %v195_v51, 0.0 }
 0x154   :  { %v312_v49 = vpop.eup %311 }
 0x155   :  { %v184_v50 = vsel %vm89_vm1, %v312_v49, 0.0  ;;  %v196_v53 = vmul.f32 %v312_v49, %v454_v2  ;;  %v314_v63 = vpop.eup %313 }
 0x156   :  { %185 = vadd.xlane.f32.xlu1 %v184_v50  ;;  %v108_v1 = vmul.f32 %v314_v63, %v106_v0  ;;  %v316_v2 = vpop.eup %315 }
 0x157   :  { %v200_v54 = vsel %vm89_vm1, %v196_v53, 0.0  ;;  %v109_v6 = vmul.f32 %v316_v2, %v107_v4  ;;  %v318_v7 = vpop.eup %317 }
 0x158   :  { %v179_v11 = vmul.f32 %v318_v7, %v177_v9  ;;  %v320_v12 = vpop.eup %319  ;;  %v193_v22 = vmul.f32 %v318_v7, %v191_v19 }
 0x159   :  { %v180_v17 = vmul.f32 %v320_v12, %v178_v14  ;;  %v194_v27 = vmul.f32 %v320_v12, %v192_v24 }
 0x15a   :  { %198 = vadd.xlane.f32.xlu1 %v197_v52  ;;  %v245_v52 = vld [vmem:[#allocation2 + $0x8] sm:$0xff] }
 0x15e   :  { %201 = vadd.xlane.f32.xlu1 %v200_v54 }
 0x1d7   :  { %v130_v3 = vpop.xlane.xlu1 %129 }
 0x1d8   :  { %v134_v5 = vadd.f32 %v130_v3, %v108_v1 }
 0x1da   :  { %137 = vst.msk [vmem:[#allocation4] sm:$0xff] %vm66_vm0, %v134_v5 }
 0x1db   :  { %v133_v8 = vpop.xlane.xlu0 %132 }
 0x1dc   :  { %v135_v10 = vadd.f32 %v133_v8, %v109_v6 }
 0x1de   :  { %138 = vst.msk [vmem:[#allocation4 + $0x8] sm:$0xff] %vm66_vm0, %v135_v10 }
 0x1df   :  { %v183_v13 = vpop.xlane.xlu1 %182 }
 0x1e0   :  { %v187_v15 = vadd.f32 %v183_v13, %v179_v11 }
 0x1e1   :  { %v226_v16 = vld [vmem:[#allocation4] sm:$0xff] }
 0x1e2   :  { %189 = vst.msk [vmem:[#allocation6] sm:$0xff] %vm66_vm0, %v187_v15  ;;  %321 = vlog2.f32 %v226_v16 }
 0x1e3   :  { %v186_v18 = vpop.xlane.xlu1 %185 }
 0x1e4   :  { %v188_v20 = vadd.f32 %v186_v18, %v180_v17 }
 0x1e5   :  { %v227_v21 = vld [vmem:[#allocation4 + $0x8] sm:$0xff] }
 0x1e6   :  { %190 = vst.msk [vmem:[#allocation6 + $0x8] sm:$0xff] %vm66_vm0, %v188_v20  ;;  %323 = vlog2.f32 %v227_v21 }
 0x1e7   :  { %v199_v23 = vpop.xlane.xlu1 %198 }
 0x1e8   :  { %v203_v25 = vadd.f32 %v199_v23, %v193_v22 }
 0x1e9   :  { %v216_v26 = vld [vmem:[#allocation6] sm:$0xff] }
 0x1ea   :  { %325 = vrcp.f32 %v216_v26  ;;  %205 = vst.msk [vmem:[#allocation7] sm:$0xff] %vm66_vm0, %v203_v25 }
 0x1eb   :  { %v202_v28 = vpop.xlane.xlu1 %201 }
 0x1ec   :  { %v204_v29 = vadd.f32 %v202_v28, %v194_v27  ;;  %v322_v31 = vpop.eup %321 }
 0x1ed   :  { %v217_v30 = vld [vmem:[#allocation6 + $0x8] sm:$0xff]  ;;  %v229_v33 = vmul.f32 0.6931472, %v322_v31 }
 0x1ee   :  { %327 = vrcp.f32 %v217_v30  ;;  %206 = vst.msk [vmem:[#allocation7 + $0x8] sm:$0xff] %vm66_vm0, %v204_v29 }
 0x1ef   :  { %v232_v43 = vadd.f32 %v229_v33, %v224_v37 }
 0x1f0   :  { %v324_v35 = vpop.eup %323 }
 0x1f1   :  { %v212_v34 = vld [vmem:[#allocation7] sm:$0xff]  ;;  %v231_v40 = vmul.f32 0.6931472, %v324_v35 }
 0x1f2   :  { %v214_v36 = vmul.f32 0.5, %v212_v34 }
 0x1f3   :  { %v233_v50 = vadd.f32 %v231_v40, %v225_v46 }
 0x1f4   :  { %v326_v38 = vpop.eup %325 }
 0x1f5   :  { %v219_v41 = vmul.f32 %v326_v38, %v214_v36  ;;  %v213_v42 = vld [vmem:[#allocation7 + $0x8] sm:$0xff] }
 0x1f6   :  { %v215_v44 = vmul.f32 0.5, %v213_v42 }
 0x1f7   :  { %v234_v47 = vsub.f32 %v219_v41, %v232_v43 }
 0x1f8   :  { %v328_v48 = vpop.eup %327 }
 0x1f9   :  { %v221_v49 = vmul.f32 %v328_v48, %v215_v44  ;;  %v250_v51 = vadd.f32 %v244_v45, %v234_v47 }
 0x1fb   :  { %v235_v53 = vsub.f32 %v221_v49, %v233_v50  ;;  %252 = vst.msk [vmem:[#allocation2] sm:$0xff] %vm66_vm0, %v250_v51 }
 0x1fd   :  { %v251_v54 = vadd.f32 %v245_v52, %v235_v53 }
 0x1ff   :  { %253 = vst.msk [vmem:[#allocation2 + $0x8] sm:$0xff] %vm66_vm0, %v251_v54 }
 0x202   :  { %v256_v55 = vld [vmem:[#allocation2] sm:$0xff] }
 0x203   :  { %v258_v57 = vsel %vm66_vm0, %v256_v55, 0.0 }
 0x206   :  { %v257_v56 = vld [vmem:[#allocation2 + $0x8] sm:$0xff] }
 0x207   :  { %v259_v58 = vsel %vm66_vm0, %v257_v56, 0.0 }
 0x208   :  { %v260_v59 = vadd.f32 %v259_v58, %v258_v57 }
 0x20a   :  { %261 = vadd.xlane.f32.xlu0 %v260_v59 }
 0x297   :  { %v262_v60 = vpop.xlane.xlu0 %261 }
 0x298   :  { %v263_v61 = vrot.slane %v262_v60, 4 }
 0x29a   :  { %v264_v62 = vadd.f32 %v263_v61, %v262_v60 }
 0x29c   :  { %v265_v63 = vrot.slane %v264_v62, 2 }
 0x29e   :  { %v266_v0 = vadd.f32 %v265_v63, %v264_v62 }
 0x2a0   :  { %v267_v1 = vrot.slane %v266_v0, 1 }
 0x2a2   :  { %v268_v2 = vadd.f32 %v267_v1, %v266_v0 }
 0x2a4   :  { %293 = vpush %v268_v2 }
 0x2d5   :  { %s294_s7 = spop %293 }
 0x2d6   :  { %s270_s8 = smul.f32 -0.25, %s294_s7 }
 0x2d8   :  { %v271_v3 = vstv %s270_s8 }
 0x2d9   :  { %272 = vst [vmem:[#allocation13] sm:$0x1] %v271_v3 }
 0x2da   :  { %384 = shalt.err (!%p381_p6)
}
 0x2db   :  { %s385_s13 = scalar_lea.hbm %s516_s2, 16 }
 0x2dc   :  { %p386_p7 = scmp.ne.s32.totalorder %s516_s2, %s385_s13  ;;  %p389_p8 = scmp.lt.u32.totalorder %s385_s13, %s516_s2 }
 0x2de   :  { %p391_p9 = pnand %p389_p8, %p386_p7 }
 0x2e0   :  { %394 = shalt.err (!%p391_p9)
}
 0x2e1   :  { %282 = dma.vmem_to_hbm [thread:$0]  %s280_s6, 16, %s516_s2, [#allocation10]  }
 0x2e2   :  { %399 = dma.done.wait [#allocation10], 16  }
 0x2e3   :  { %400 = vsyncadd [#allocation10], 4294967280 }
 0x2e4   :  { %286 = vsyncpa [#allocation9], 1 }
 0x2e5   :  { %287 = vsyncpa [#allocation12], 1 }
 0x2e6   :  { %288 = vsyncpa [#allocation10], 1 }

</bundles_post_ra>
